<compile_context>
chip_gen: v6e
topology: v6e:2x2x1
jax: 0.10.0
libtpu: 0.0.40
codegen_flags: <defaults>
</compile_context>

<pallas_src>
from typing import NamedTuple, Tuple

import jax
import jax.numpy as jnp
from jax.experimental import pallas as pl
from jax.experimental.pallas import tpu as pltpu


def _round_up(v, m):
    return ((v + m - 1) // m) * m


class AlignmentPlan(NamedTuple):
    m: int
    k: int
    nout: int
    m_p: int
    k_p: int
    nout_p: int
    tm: int
    tk: int
    tn: int
    grid: Tuple[int, int, int]
    w_buffers: int
    vmem_limit: int
    out_dtype: jnp.dtype


def make_plan(input_shape, output_shape, *, tile_m=512, tile_n=512, tile_k=1024,
              out_dtype=jnp.float32):
    """Static tiling / padding plan; compute once per shape configuration."""
    m = input_shape[0]
    k = 1
    for d in input_shape[1:]:
        k *= d
    nout = 1
    for d in output_shape[1:]:
        nout *= d

    # Lane / MXU alignment: K and Nout padded to multiples of 256 (v6e/v7x MXU
    # is 2x256x256); M padded to a multiple of 16 (bf16 packs 2 rows/sublane).
    nout_p = _round_up(nout, 256)
    tn = min(tile_n, nout_p)
    nout_p = _round_up(nout_p, tn)

    k_p = _round_up(k, 256)
    tk = min(tile_k, k_p)
    k_p = _round_up(k_p, tk)

    # Whole (padded) M in a single tile whenever it fits: W (the dominant
    # operand) then becomes a single-pass HBM stream.
    if m <= tile_m:
        tm = _round_up(m, 16)
    else:
        tm = tile_m
    m_p = _round_up(m, tm)

    ni = m_p // tm
    nj = nout_p // tn
    nk = k_p // tk

    # v7x has 2 TensorCores: expose >= 2 blocks on the "parallel" axes so both
    # cores get work.  Harmless on v5e/v6e (single TC); W is still read once.
    if ni * nj == 1 and tn > 128:
        tn //= 2
        nj = nout_p // tn

    # Triple-buffer the weight stream only when there is an actual K pipeline.
    w_buffers = 3 if nk >= 2 else 2

    out_bytes = jnp.dtype(out_dtype).itemsize
    footprint = (2 * tm * tk * 2                 # x, double-buffered, bf16
                 + w_buffers * tk * tn * 2       # weight stream, bf16
                 + 2 * 8 * tn * 4                # bias (sublane-padded), f32
                 + 2 * tm * tn * out_bytes       # output, double-buffered
                 + tm * tn * 4)                  # f32 accumulator scratch
    # Derive the scoped-VMEM limit from real tile bytes; cap below v7x's 64 MiB.
    vmem_limit = min(max(int(footprint * 1.5) + (2 << 20), 16 << 20), 56 << 20)

    return AlignmentPlan(m, k, nout, m_p, k_p, nout_p, tm, tk, tn,
                         (ni, nj, nk), w_buffers, vmem_limit, jnp.dtype(out_dtype))


def prepare_params(w, b, plan: AlignmentPlan):
    """One-time cast/pad of the alignment head parameters.

    Hoisted out of the per-call path so the forward pass never re-reads W in
    f32 (which would triple the dominant HBM stream)."""
    k, nout = plan.k, plan.nout
    assert w.shape == (k, nout), (w.shape, (k, nout))
    assert b.shape == (nout,), (b.shape, (nout,))
    wp = jnp.pad(w.astype(jnp.bfloat16),
                 ((0, plan.k_p - k), (0, plan.nout_p - nout)))
    bp = jnp.pad(b.astype(jnp.float32),
                 (0, plan.nout_p - nout)).reshape(1, plan.nout_p)
    return wp, bp


def _alignment_kernel(x_ref, w_ref, b_ref, o_ref, acc_ref):
    # x_ref: (tm, tk) bf16   w_ref: (tk, tn) bf16   b_ref: (1, tn) f32
    # o_ref: (tm, tn)        acc_ref: (tm, tn) f32 scratch
    kk = pl.program_id(2)

    @pl.when(kk == 0)
    def _():
        acc_ref[...] = jnp.zeros_like(acc_ref)

    acc_ref[...] += jnp.dot(x_ref[...], w_ref[...],
                            preferred_element_type=jnp.float32)

    @pl.when(kk == pl.num_programs(2) - 1)
    def _():
        o_ref[...] = (acc_ref[...] + b_ref[...]).astype(o_ref.dtype)


def alignment_forward(x, wp, bp, plan: AlignmentPlan, output_shape):
    """x: (N, C, H, W); wp/bp: pre-padded params from prepare_params."""
    m, k = plan.m, plan.k
    x2d = x.reshape(m, -1)                       # row-major flatten == torch reshape
    xp = jnp.pad(x2d.astype(jnp.bfloat16),
                 ((0, plan.m_p - m), (0, plan.k_p - k)))

    ni, nj, nk = plan.grid
    tm, tk, tn = plan.tm, plan.tk, plan.tn
    out_bytes = plan.out_dtype.itemsize

    # Deeper weight-stream pipeline only when a K pipeline actually exists.
    if nk >= 2:
        w_spec = pl.BlockSpec((tk, tn), lambda i, j, kk: (kk, j),
                              pipeline_mode=pl.Buffered(plan.w_buffers))
    else:
        w_spec = pl.BlockSpec((tk, tn), lambda i, j, kk: (kk, j))

    # Advisory cost: account for operand revisits (x re-read per j block,
    # W re-read per i block).
    cost = pl.CostEstimate(
        flops=2 * plan.m_p * plan.k_p * plan.nout_p,
        transcendentals=0,
        bytes_accessed=(plan.m_p * plan.k_p * 2 * nj
                        + plan.k_p * plan.nout_p * 2 * ni
                        + plan.nout_p * 4 * ni
                        + plan.m_p * plan.nout_p * out_bytes),
    )

    out = pl.pallas_call(
        _alignment_kernel,
        out_shape=jax.ShapeDtypeStruct((plan.m_p, plan.nout_p), plan.out_dtype),
        grid_spec=pltpu.PrefetchScalarGridSpec(
            num_scalar_prefetch=0,
            grid=(ni, nj, nk),
            in_specs=[
                pl.BlockSpec((tm, tk), lambda i, j, kk: (i, kk)),   # activations
                w_spec,                                             # weight slab
                pl.BlockSpec((1, tn), lambda i, j, kk: (0, j)),     # bias (const over k)
            ],
            out_specs=pl.BlockSpec((tm, tn), lambda i, j, kk: (i, j)),
            scratch_shapes=[pltpu.VMEM((tm, tn), jnp.float32)],
        ),
        compiler_params=pltpu.CompilerParams(
            dimension_semantics=("parallel", "parallel", "arbitrary"),
            vmem_limit_bytes=plan.vmem_limit,
        ),
        cost_estimate=cost,
    )(xp, wp, bp)

    return out[:m, :plan.nout].reshape(output_shape)


if __name__ == "__main__":
    # Small shapes consistent with the module's (input_shape, output_shape) contract.
    input_shape = (2, 4, 16, 16)    # NCHW  -> K = 1024
    output_shape = (2, 8, 32)       #          Nout = 256

    key = jax.random.PRNGKey(0)
    kx, kw, kb = jax.random.split(key, 3)
    x = jax.random.normal(kx, input_shape, dtype=jnp.float32)

    k_in = 4 * 16 * 16
    n_out = 8 * 32
    scale = 1.0 / jnp.sqrt(jnp.float32(k_in))
    w = jax.random.normal(kw, (k_in, n_out), dtype=jnp.float32) * scale
    b = jax.random.normal(kb, (n_out,), dtype=jnp.float32) * 0.01

    # One-time plan + parameter preparation (cast/pad hoisted out of forward).
    plan = make_plan(input_shape, output_shape)
    wp, bp = prepare_params(w, b, plan)

    y = alignment_forward(x, wp, bp, plan, output_shape)
    y = jax.block_until_ready(y)

    # Contract check mirroring AlignmentModel.test()
    assert y.shape == output_shape, (y.shape, output_shape)

    # Reference check against plain JAX using the same bf16-input / f32-acc math.
    x_bf = x.reshape(input_shape[0], -1).astype(jnp.bfloat16)
    w_bf = w.astype(jnp.bfloat16)
    y_ref = (jnp.dot(x_bf, w_bf, preferred_element_type=jnp.float32)
             + b.astype(jnp.float32)).reshape(output_shape)
    assert jnp.allclose(y, y_ref, atol=2e-2, rtol=2e-2), \
        float(jnp.max(jnp.abs(y - y_ref)))

    print("KERNEL_OK")
</pallas_src>

<mosaic_0001>
module attributes {stable_mosaic.version = 11 : i64} {
  func.func @_alignment_kernel(%arg0: i32, %arg1: i32, %arg2: i32, %arg3: memref<16x1024xbf16, #tpu.memory_space<vmem>>, %arg4: memref<1024x128xbf16, #tpu.memory_space<vmem>>, %arg5: memref<1x128xf32, #tpu.memory_space<vmem>>, %arg6: memref<16x128xf32, #tpu.memory_space<vmem>>, %arg7: memref<16x128xf32, #tpu.memory_space<vmem>>) attributes {dimension_semantics = [#tpu.dimension_semantics<parallel>, #tpu.dimension_semantics<parallel>, #tpu.dimension_semantics<arbitrary>], iteration_bounds = array<i64: 1, 2, 1>, scalar_prefetch = 0 : i64, scratch_operands = 1 : i64, tpu.core_type = #tpu.core_type<tc>, window_params = [{transform_indices = @transform_0, window_bounds = array<i64: 16, 1024>}, {transform_indices = @transform_1, window_bounds = array<i64: 1024, 128>}, {transform_indices = @transform_2, window_bounds = array<i64: 1, 128>}, {transform_indices = @transform_3, window_bounds = array<i64: 16, 128>}]} {
    %c0_i32 = arith.constant 0 : i32
    %0 = arith.cmpi eq, %arg2, %c0_i32 : i32
    %1 = arith.extui %0 : i1 to i32
    %c0_i32_0 = arith.constant 0 : i32
    %2 = arith.cmpi ne, %1, %c0_i32_0 : i32
    scf.if %2 {
      %cst_10 = arith.constant 0.000000e+00 : f32
      %12 = vector.broadcast %cst_10 : f32 to vector<16x128xf32>
      %c0_11 = arith.constant 0 : index
      %c0_12 = arith.constant 0 : index
      %13 = vector.load %arg7[%c0_11, %c0_12] : memref<16x128xf32, #tpu.memory_space<vmem>>, vector<16x128xf32>
      tpu.vector_store %arg7[%c0_11, %c0_12], %12 {strides = array<i32>} : memref<16x128xf32, #tpu.memory_space<vmem>>, vector<16x128xf32>,
    } else {
    }
    %c0 = arith.constant 0 : index
    %c0_1 = arith.constant 0 : index
    %3 = vector.load %arg7[%c0, %c0_1] : memref<16x128xf32, #tpu.memory_space<vmem>>, vector<16x128xf32>
    %c0_2 = arith.constant 0 : index
    %c0_3 = arith.constant 0 : index
    %4 = vector.load %arg3[%c0_2, %c0_3] : memref<16x1024xbf16, #tpu.memory_space<vmem>>, vector<16x1024xbf16>
    %c0_4 = arith.constant 0 : index
    %c0_5 = arith.constant 0 : index
    %5 = vector.load %arg4[%c0_4, %c0_5] : memref<1024x128xbf16, #tpu.memory_space<vmem>>, vector<1024x128xbf16>
    %cst = arith.constant dense<0.000000e+00> : vector<16x128xf32>
    %6 = tpu.matmul %4, %5, %cst {dimension_numbers = #tpu.dot_dimension_numbers<[1], [0], [0], [1], [0, 0, 1, 1], [], []>} : vector<16x1024xbf16>, vector<1024x128xbf16>, vector<16x128xf32> -> vector<16x128xf32>
    %7 = arith.addf %3, %6 : vector<16x128xf32>
    %c0_6 = arith.constant 0 : index
    %c0_7 = arith.constant 0 : index
    %8 = vector.load %arg7[%c0_6, %c0_7] : memref<16x128xf32, #tpu.memory_space<vmem>>, vector<16x128xf32>
    tpu.vector_store %arg7[%c0_6, %c0_7], %7 {strides = array<i32>} : memref<16x128xf32, #tpu.memory_space<vmem>>, vector<16x128xf32>,
    %c0_i32_8 = arith.constant 0 : i32
    %9 = arith.cmpi eq, %arg2, %c0_i32_8 : i32
    %10 = arith.extui %9 : i1 to i32
    %c0_i32_9 = arith.constant 0 : i32
    %11 = arith.cmpi ne, %10, %c0_i32_9 : i32
    scf.if %11 {
      %c0_10 = arith.constant 0 : index
      %c0_11 = arith.constant 0 : index
      %12 = vector.load %arg7[%c0_10, %c0_11] : memref<16x128xf32, #tpu.memory_space<vmem>>, vector<16x128xf32>
      %c0_12 = arith.constant 0 : index
      %c0_13 = arith.constant 0 : index
      %13 = vector.load %arg5[%c0_12, %c0_13] : memref<1x128xf32, #tpu.memory_space<vmem>>, vector<1x128xf32>
      %14 = vector.broadcast %13 : vector<1x128xf32> to vector<16x128xf32>
      %15 = arith.addf %12, %14 : vector<16x128xf32>
      %c0_14 = arith.constant 0 : index
      %c0_15 = arith.constant 0 : index
      %16 = vector.load %arg6[%c0_14, %c0_15] : memref<16x128xf32, #tpu.memory_space<vmem>>, vector<16x128xf32>
      tpu.vector_store %arg6[%c0_14, %c0_15], %15 {strides = array<i32>} : memref<16x128xf32, #tpu.memory_space<vmem>>, vector<16x128xf32>,
    } else {
    }
    return
  }
  func.func @transform_0(%arg0: i32, %arg1: i32, %arg2: i32) -> (i32, i32) {
    %c0_i32 = arith.constant 0 : i32
    return %arg0, %arg2 : i32, i32
  }
  func.func @transform_1(%arg0: i32, %arg1: i32, %arg2: i32) -> (i32, i32) {
    %c0_i32 = arith.constant 0 : i32
    return %arg2, %arg1 : i32, i32
  }
  func.func @transform_2(%arg0: i32, %arg1: i32, %arg2: i32) -> (i32, i32) {
    %c0_i32 = arith.constant 0 : i32
    %c0_i32_0 = arith.constant 0 : i32
    return %c0_i32, %arg1 : i32, i32
  }
  func.func @transform_3(%arg0: i32, %arg1: i32, %arg2: i32) -> (i32, i32) {
    %c0_i32 = arith.constant 0 : i32
    return %arg0, %arg1 : i32, i32
  }
}

</mosaic_0001>

<bundles_post_ra>
// kernel: tpu_custom_call.1
= control target key start
LH: loop header
LB: loop body
LE: loop exit
PB: predicated region body
PF: predicated region fallthrough
CT: control target
= control target key end

     0   :  { %8 = vsyncpa [#allocation4], 0  ;;  %s1882_s0 = inlined_call_operand.hbm [shape: bf16[16,1024], index: 0, kind: input, shape index: {}]   ;;  %s1883_s1 = inlined_call_operand.hbm [shape: bf16[1024,256], index: 1, kind: input, shape index: {}]   ;;  %s1884_s2 = inlined_call_operand.vmem [shape: f32[1,256], index: 2, kind: input, shape index: {}]   ;;  %s1885_s3 = inlined_call_operand.hbm [shape: f32[16,256], index: 3, kind: output, shape index: {}]  }
   0x1   :  { %9 = vsyncpa [#allocation7], 0 }
   0x2   :  { %11 = vsyncpa [#allocation7 + $0x1], 0 }
   0x3   :  { %12 = vsyncpa [#allocation5], 0 }
   0x4   :  { %14 = vsyncpa [#allocation5 + $0x1], 0  ;;  %s1635_s12 = smov 0   ;;  %s1637_s13 = smov 0  }
   0x5   :  { %s1639_s14 = smov 0   ;;  %s1641_s15 = smov 0  }
   0x6   :  { %s1643_s16 = smov 0   ;;  %s1645_s17 = smov 0  }
   0x7 LB: > { %1891 = sst [smem:[#allocation12_spill]] %s1602_s17  ;;  %s1143_s18 = sadd.s32 4294967295, %s1602_s17   ;;  %s1602_s17 = sphi %s1645_s17, %s20_s17   ;;  %s1598_s16 = sphi %s1643_s16, %s1911_s16   ;;  %s1594_s15 = sphi %s1641_s15, %s1910_s15   ;;  %s1590_s14 = sphi %s1639_s14, %s1909_s14   ;;  %s1586_s13 = sphi %s1637_s13, %s1908_s13   ;;  %s1582_s12 = sphi %s1635_s12, %s1907_s12  }
   0x8   : > { %s1144_s19 = sadd.s32 4294967294, %s1602_s17   ;;  %p83_p0 = scmp.ne.s32.totalorder %s1590_s14, %s1586_s13 }
   0x9   : > { %p84_p1 = scmp.eq.s32.totalorder %s1602_s17, 0  ;;  %p89_p2 = scmp.ne.s32.totalorder %s1586_s13, %s1582_s12 }
   0xa   : > { %p1672_p3 = scmp.eq.s32.totalorder %s1143_s18, 0  ;;  %p141_p5 = scmp.eq.s32.totalorder %s1143_s18, 1 }
   0xb   : > { %p1676_p4 = por %p84_p1, %p83_p0  ;;  %p147_p7 = scmp.eq.s32.totalorder %s1144_s19, 1 }
   0xc   : > { %p1682_p6 = por %p1672_p3, %p89_p2  ;;  %p1686_p8 = por %p141_p5, %p83_p0 }
   0xd   : > { %p1145_p9 = scmp.ge.s32.totalorder %s1602_s17, 1  ;;  %p1691_p10 = por %p147_p7, %p89_p2 }
   0xe   : > { %s1894_s22 = scalar_select %p1682_p6, 1, 0 }
   0xf   : > { %s1895_s23 = scalar_select %p1686_p8, 1, 0 }
  0x10   : > { %s1896_s24 = scalar_select %p1691_p10, 1, 0 }
  0x11   : > { %p154_p11 = scmp.lt.s32.totalorder %s1602_s17, 3  ;;  %s1604_s26 = smov [#allocation3]  }
  0x12   : > { %1897 = sst [smem:[#allocation13_spill]] %s1896_s24  ;;  %s172_s27 = sshll.u32 %s1604_s26, 4  ;;  %s173_s27 = int_to_ptr.vmem [resolvable:$true] %s172_s27 }
  0x13   : > { %p1696_p12 = pnand %p1145_p9, %p154_p11  ;;  %p1340_p1 = scmp.lt.s32.totalorder %s1602_s17, 2 }
  0x14   : > { %s35_s30 = sadd.s32 1, %s1598_s16  ;;  %s1475_s4 = scalar_lea.vmem %s173_s27, 1024 }
  0x15   : > { %p1327_p13 = pneg %p1696_p12  ;;  %p1712_p2 = pnand %p1340_p1, %p1676_p4 }
  0x16   : > { %p1476_p9 = scmp.ne.s32.totalorder %s173_s27, %s1475_s4  ;;  %p1483_p0 = scmp.lt.s32.totalorder %s173_s27, %s173_s27 }
  0x17   : > { %p1706_p5 = pnand %p1327_p13, %p1672_p3  ;;  %p1484_p8 = scmp.lt.s32.totalorder %s1475_s4, %s1475_s4 }
  0x19   : > { %p1466_p7 = pneg %p1706_p5  ;;  %p1485_p6 = por %p1484_p8, %p1483_p0 }
  0x1b   : > { %p1478_p11 = pnand %p1476_p9, %p1466_p7 }
  0x1d   : > { %p1479_p10 = pneg %p1478_p11 }
  0x1f   : > { %p1486_p13 = pnand %p1485_p6, %p1479_p10 }
  0x21   : > { %1489 = shalt.err (!%p1486_p13)
}
  0x22   : > { %s1605_s5 = smov 512   ;;  %s1606_s6 = smov 32  }
  0x23   : > { %1330 = dma.hbm_to_vmem [thread:$0]  (!%p1706_p5), %s1882_s0, 1024, %s173_s27, [#allocation4], %s1605_s5, %s1605_s5, %s1606_s6  }
  0x24   : > { %p37_p4 = scmp.ge.s32.totalorder %s35_s30, 2  ;;  %s76_s9 = sadd.s32 1, %s1590_s14 }
  0x25   : > { %s186_s10 = sand.u32 1, %s1590_s14   ;;  %s1149_s19 = sshll.u32 %s1598_s16, 6 }
  0x26   : > { %s1913_s30 = smov (%p37_p4, %s35_s30), 0  ;;  %s1148_s11 = sshll.u32 %s186_s10, 9 }
  0x27   : > { %s72_s18 = ssub.s32 %s1598_s16, %s1913_s30  ;;  %s198_s4 = scalar_lea.hbm %s1883_s1, %s1149_s19 }
  0x28   : > { %p74_p6 = scmp.eq.s32.totalorder %s72_s18, 0  ;;  %s190_s28 = scalar_lea.vmem [#allocation6], %s1148_s11 }
  0x29   : > { %s199_s17 = sshll.u32 %s190_s28, 4  ;;  %s187_s27 = scalar_lea.sflag [#allocation7], %s186_s10  ;;  %s200_s17 = int_to_ptr.vmem [resolvable:$true] %s199_s17 }
  0x2a   : > { %s1735_s24 = scalar_select %p74_p6, %s1590_s14, %s76_s9  }
  0x2b   : > { %p1492_p8 = pneg %p1712_p2  ;;  %s1503_s5 = scalar_lea.vmem %s200_s17, 8192 }
  0x2c   : > { %p1504_p10 = scmp.ne.s32.totalorder %s200_s17, %s1503_s5  ;;  %s1607_s6 = smov [#allocation6]  }
  0x2d   : > { %s1508_s7 = sshll.u32 %s1607_s6, 4  ;;  %s1509_s7 = int_to_ptr.vmem [resolvable:$false] %s1508_s7 }
  0x2e   : > { %p1506_p0 = pnand %p1504_p10, %p1492_p8  ;;  %s1510_s8 = scalar_lea.vmem %s1509_s7, 16384 }
  0x2f   : > { %p1511_p5 = scmp.lt.s32.totalorder %s200_s17, %s1509_s7  ;;  %p1512_p7 = scmp.lt.s32.totalorder %s1510_s8, %s1503_s5 }
  0x30   : > { %p1507_p1 = pneg %p1506_p0 }
  0x31   : > { %p1513_p9 = por %p1512_p7, %p1511_p5 }
  0x33   : > { %p1514_p11 = pnand %p1513_p9, %p1507_p1 }
  0x35   : > { %1517 = shalt.err (!%p1514_p11)
}
  0x36   : > { %s1608_s11 = smov 128   ;;  %s1609_s9 = smov 64  }
  0x37   : > { %s1610_s18 = smov 4   ;;  %217 = sbr.rel (%p1696_p12) target bundleno = 353 (0x161), region = 32 }
  0x38   : > { %1334 = dma.hbm_to_vmem [thread:$0]  (!%p1712_p2), %s198_s4, 8192, %s200_s17, %s187_s27, %s1608_s11, %s1609_s9, %s1610_s18  }
  0x3c   : > { %1569 = dma.done.wait (%p1672_p3), [#allocation4], 1024  }
  0x3d   : > { %1571 = vsyncadd (%p1672_p3), [#allocation4], 4294966272  ;;  %s1748_s10 = sand.u32 1, %s1586_s13   ;;  %p1901_p2 = scmp.ne.s32.totalorder %s1894_s22, 0 }
  0x3e   : > { %s1152_s19 = sshll.u32 %s1748_s10, 9  ;;  %s224_s21 = scalar_lea.sflag [#allocation7], %s1748_s10 }
  0x3f   : > { %s1752_s26 = scalar_lea.vmem [#allocation6], %s1152_s19 }
  0x40   : > { %1573 = dma.done.wait (%p1901_p2), %s224_s21, 8192  }
  0x41   : > { %1575 = vsyncadd (%p1901_p2), %s224_s21, 4294959104  ;;  %v1400_v0 = vld [vmem:[%s1752_s26 + $0x78] sm:$0xff]   ;;  %v1404_v4 = vld [vmem:[%s1752_s26 + $0x70] sm:$0xff]   ;;  %p256_p3 = scmp.lt.s32.totalorder %s1594_s15, 1  ;;  %s1153_s29 = sshll.u32 %s1748_s10, 4 }
  0x42   : > { %v1401_v1 = vld [vmem:[%s1752_s26 + $0xf8] sm:$0xff]   ;;  %1231 = vmatprep.subr.bf16.mxu0 %v1400_v0  ;;  %v1405_v5 = vld [vmem:[%s1752_s26 + $0xf0] sm:$0xff]   ;;  %v1408_v8 = vld [vmem:[%s1752_s26 + $0x68] sm:$0xff]   ;;  %s252_s4 = scalar_lea.vmem [#allocation8], %s1153_s29  ;;  %s1228_s27 = sshll.u32 %s1594_s15, 7 }
  0x43   : > { %v1402_v2 = vld [vmem:[%s1752_s26 + $0x38] sm:$0xff]   ;;  %1253 = vmatprep.subr.bf16.mxu1 %v1401_v1  ;;  %v1406_v6 = vld [vmem:[%s1752_s26 + $0x30] sm:$0xff]   ;;  %v1409_v9 = vld [vmem:[%s1752_s26 + $0xe8] sm:$0xff]   ;;  %s257_s17 = scalar_select %p256_p3, %s1594_s15, 1 }
  0x44   : > { %v1403_v3 = vld [vmem:[%s1752_s26 + $0xb8] sm:$0xff]   ;;  %1232 = vmatpush3.bf16.msra.mxu0 %v1402_v2  ;;  %v1407_v7 = vld [vmem:[%s1752_s26 + $0xb0] sm:$0xff]   ;;  %v1410_v10 = vld [vmem:[%s1752_s26 + $0x28] sm:$0xff]   ;;  %s1029_s28 = sshll.u32 %s252_s4, 4  ;;  %s1834_s7 = scalar_lea.hbm %s1885_s3, %s1228_s27  ;;  %s1829_s28 = int_to_ptr.vmem [resolvable:$true] %s1029_s28 }
  0x45   : > { %1254 = vmatpush3.bf16.msra.mxu1 %v1403_v3  ;;  %1233 = vmatprep.subr.bf16.mxu0 %v1404_v4  ;;  %v1411_v11 = vld [vmem:[%s1752_s26 + $0xa8] sm:$0xff]   ;;  %v1412_v12 = vld [vmem:[%s1752_s26 + $0x60] sm:$0xff]   ;;  %v1416_v16 = vld [vmem:[%s1752_s26 + $0x58] sm:$0xff]   ;;  %s258_s25 = scalar_lea.vmem %s1884_s2, %s257_s17  ;;  %s1014_s8 = scalar_lea.sflag [#allocation5], %s1748_s10 }
  0x46   : > { %1255 = vmatprep.subr.bf16.mxu1 %v1405_v5  ;;  %v1413_v13 = vld [vmem:[%s1752_s26 + $0xe0] sm:$0xff]   ;;  %v1417_v17 = vld [vmem:[%s1752_s26 + $0xd8] sm:$0xff]   ;;  %v1420_v20 = vld [vmem:[%s1752_s26 + $0x50] sm:$0xff]   ;;  %s1518_s11 = scalar_lea.vmem %s1829_s28, 256  ;;  %p1902_p13 = scmp.ne.s32.totalorder %s1895_s23, 0 }
  0x47   : > { %v1414_v14 = vld [vmem:[%s1752_s26 + $0x20] sm:$0xff]   ;;  %v1418_v18 = vld [vmem:[%s1752_s26 + $0x18] sm:$0xff]   ;;  %v1421_v21 = vld [vmem:[%s1752_s26 + $0xd0] sm:$0xff]   ;;  %p1519_p12 = scmp.ne.s32.totalorder %s1829_s28, %s1518_s11  ;;  %s1611_s15 = smov [#allocation8]  }
  0x48   : > { %1234 = vmatpush3.bf16.msra.mxu0 %v1406_v6  ;;  %v1415_v15 = vld [vmem:[%s1752_s26 + $0xa0] sm:$0xff]   ;;  %v1419_v19 = vld [vmem:[%s1752_s26 + $0x98] sm:$0xff]   ;;  %v1422_v22 = vld [vmem:[%s1752_s26 + $0x10] sm:$0xff]   ;;  %s1522_s9 = sshll.u32 %s1611_s15, 4  ;;  %s1523_s9 = int_to_ptr.vmem [resolvable:$false] %s1522_s9 }
  0x49   : > { %1256 = vmatpush3.bf16.msra.mxu1 %v1407_v7  ;;  %1235 = vmatprep.subr.bf16.mxu0 %v1408_v8  ;;  %v1423_v23 = vld [vmem:[%s1752_s26 + $0x90] sm:$0xff]   ;;  %v1424_v24 = vld [vmem:[%s1752_s26 + $0x48] sm:$0xff]   ;;  %v1428_v28 = vld [vmem:[%s1752_s26 + $0x40] sm:$0xff]   ;;  %p1520_p4 = pnand %p1519_p12, %p1902_p13  ;;  %s1524_s18 = scalar_lea.vmem %s1523_s9, 512 }
  0x4a   : > { %1257 = vmatprep.subr.bf16.mxu1 %v1409_v9  ;;  %v1425_v25 = vld [vmem:[%s1752_s26 + $0xc8] sm:$0xff]   ;;  %v1429_v29 = vld [vmem:[%s1752_s26 + $0xc0] sm:$0xff]   ;;  %v1432_v40 = vld [vmem:[%s1752_s26 + $0x178] sm:$0xff]   ;;  %p1525_p8 = scmp.lt.s32.totalorder %s1829_s28, %s1523_s9  ;;  %p1526_p10 = scmp.lt.s32.totalorder %s1524_s18, %s1518_s11 }
  0x4b   : > { %v1426_v26 = vld [vmem:[%s1752_s26 + $0x8] sm:$0xff]   ;;  %v1430_v30 = vld [vmem:[%s1752_s26] sm:$0xff]   ;;  %v1433_v41 = vld [vmem:[%s1752_s26 + $0x1f8] sm:$0xff]   ;;  %p1521_p6 = pneg %p1520_p4 }
  0x4c   : > { %1236 = vmatpush3.bf16.msra.mxu0 %v1410_v10  ;;  %v1427_v27 = vld [vmem:[%s1752_s26 + $0x88] sm:$0xff]   ;;  %v1431_v31 = vld [vmem:[%s1752_s26 + $0x80] sm:$0xff]   ;;  %v1434_v42 = vld [vmem:[%s1752_s26 + $0x138] sm:$0xff]   ;;  %p1527_p0 = por %p1526_p10, %p1525_p8 }
  0x4d   : > { %1258 = vmatpush3.bf16.msra.mxu1 %v1411_v11  ;;  %1237 = vmatprep.subr.bf16.mxu0 %v1412_v12  ;;  %v269_v32 = vld [vmem:[#allocation3] sm:$0xff]  ;;  %v270_v34 = vld [vmem:[#allocation3 + $0x8] sm:$0xff]  ;;  %v1435_v43 = vld [vmem:[%s1752_s26 + $0x1b8] sm:$0xff]  }
  0x4e   : > { %1259 = vmatprep.subr.bf16.mxu1 %v1413_v13  ;;  %v273_v33 = vld [vmem:[#allocation3 + $0x20] sm:$0xff]  ;;  %v274_v37 = vld [vmem:[#allocation3 + $0x28] sm:$0xff]  ;;  %v1436_v44 = vld [vmem:[%s1752_s26 + $0x170] sm:$0xff]   ;;  %p1528_p1 = pnand %p1527_p0, %p1521_p6 }
  0x4f   : > { %v1154_v35 = vcombine.low %v269_v32, %v273_v33  ;;  %v1155_v36 = vcombine.high %v269_v32, %v273_v33  ;;  %v1156_v38 = vcombine.low %v270_v34, %v274_v37  ;;  %v1157_v39 = vcombine.high %v270_v34, %v274_v37  ;;  %v1437_v45 = vld [vmem:[%s1752_s26 + $0x1f0] sm:$0xff]   ;;  %v1440_v48 = vld [vmem:[%s1752_s26 + $0x168] sm:$0xff]   ;;  %v1444_v52 = vld [vmem:[%s1752_s26 + $0x160] sm:$0xff]  }
  0x50   : > { %1238 = vmatpush3.bf16.msra.mxu0 %v1414_v14  ;;  %v1438_v46 = vld [vmem:[%s1752_s26 + $0x130] sm:$0xff]   ;;  %v1441_v49 = vld [vmem:[%s1752_s26 + $0x1e8] sm:$0xff]   ;;  %v1445_v53 = vld [vmem:[%s1752_s26 + $0x1e0] sm:$0xff]  }
  0x51   : > { %1260 = vmatpush3.bf16.msra.mxu1 %v1415_v15  ;;  %1239 = vmatprep.subr.bf16.mxu0 %v1416_v16  ;;  %v1439_v47 = vld [vmem:[%s1752_s26 + $0x1b0] sm:$0xff]   ;;  %v1442_v50 = vld [vmem:[%s1752_s26 + $0x128] sm:$0xff]   ;;  %v1446_v54 = vld [vmem:[%s1752_s26 + $0x120] sm:$0xff]  }
  0x52   : > { %1261 = vmatprep.subr.bf16.mxu1 %v1417_v17  ;;  %861 = vmatprep.mubr.bf16.mxu0 %v1155_v36  ;;  %v1443_v51 = vld [vmem:[%s1752_s26 + $0x1a8] sm:$0xff]   ;;  %v1447_v55 = vld [vmem:[%s1752_s26 + $0x1a0] sm:$0xff]   ;;  %v1448_v56 = vld [vmem:[%s1752_s26 + $0x158] sm:$0xff]  }
  0x53   : > { %902 = vmatprep.mubr.bf16.mxu1 %v1157_v39  ;;  %v1449_v57 = vld [vmem:[%s1752_s26 + $0x1d8] sm:$0xff]   ;;  %v1452_v60 = vld [vmem:[%s1752_s26 + $0x150] sm:$0xff]   ;;  %v1456_v0 = vld [vmem:[%s1752_s26 + $0x148] sm:$0xff]  }
  0x54   : > { %1240 = vmatpush3.bf16.msra.mxu0 %v1418_v18  ;;  %v1450_v58 = vld [vmem:[%s1752_s26 + $0x118] sm:$0xff]   ;;  %v1453_v61 = vld [vmem:[%s1752_s26 + $0x1d0] sm:$0xff]   ;;  %v1457_v1 = vld [vmem:[%s1752_s26 + $0x1c8] sm:$0xff]  }
  0x55   : > { %1262 = vmatpush3.bf16.msra.mxu1 %v1419_v19  ;;  %1241 = vmatprep.subr.bf16.mxu0 %v1420_v20  ;;  %v1451_v59 = vld [vmem:[%s1752_s26 + $0x198] sm:$0xff]   ;;  %v1454_v62 = vld [vmem:[%s1752_s26 + $0x110] sm:$0xff]   ;;  %v1458_v2 = vld [vmem:[%s1752_s26 + $0x108] sm:$0xff]  }
  0x56   : > { %1263 = vmatprep.subr.bf16.mxu1 %v1421_v21  ;;  %v1455_v63 = vld [vmem:[%s1752_s26 + $0x190] sm:$0xff]   ;;  %v1459_v3 = vld [vmem:[%s1752_s26 + $0x188] sm:$0xff]   ;;  %v1460_v4 = vld [vmem:[%s1752_s26 + $0x140] sm:$0xff]  }
  0x57   : > { %v1461_v5 = vld [vmem:[%s1752_s26 + $0x1c0] sm:$0xff]   ;;  %v271_v8 = vld [vmem:[#allocation3 + $0x10] sm:$0xff]  ;;  %v272_v12 = vld [vmem:[#allocation3 + $0x18] sm:$0xff] }
  0x58   : > { %1242 = vmatpush3.bf16.msra.mxu0 %v1422_v22  ;;  %v1462_v6 = vld [vmem:[%s1752_s26 + $0x100] sm:$0xff]   ;;  %v275_v9 = vld [vmem:[#allocation3 + $0x30] sm:$0xff]  ;;  %v276_v13 = vld [vmem:[#allocation3 + $0x38] sm:$0xff] }
  0x59   : > { %1264 = vmatpush3.bf16.msra.mxu1 %v1423_v23  ;;  %1243 = vmatprep.subr.bf16.mxu0 %v1424_v24  ;;  %v1463_v7 = vld [vmem:[%s1752_s26 + $0x180] sm:$0xff]   ;;  %v1158_v10 = vcombine.low %v271_v8, %v275_v9  ;;  %v1159_v11 = vcombine.high %v271_v8, %v275_v9  ;;  %v1160_v14 = vcombine.low %v272_v12, %v276_v13 }
  0x5a   : > { %1265 = vmatprep.subr.bf16.mxu1 %v1425_v25  ;;  %v1161_v15 = vcombine.high %v272_v12, %v276_v13 }
  0x5c   : > { %1244 = vmatpush3.bf16.msra.mxu0 %v1426_v26 }
  0x5d   : > { %1266 = vmatpush3.bf16.msra.mxu1 %v1427_v27  ;;  %1245 = vmatprep.subr.bf16.mxu0 %v1428_v28 }
  0x5e   : > { %1267 = vmatprep.subr.bf16.mxu1 %v1429_v29 }
  0x60   : > { %1246 = vmatpush3.bf16.msra.mxu0 %v1430_v30 }
  0x61   : > { %1268 = vmatpush3.bf16.msra.mxu1 %v1431_v31  ;;  %1275 = vmatprep.subr.bf16.mxu0 %v1432_v40 }
  0x62   : > { %1297 = vmatprep.subr.bf16.mxu1 %v1433_v41 }
  0x63   : > { %862 = vmatmul.mubr.bf16.vlgmr.msra.gmra.mxu0 %v1154_v35 }
  0x64   : > { %903 = vmatmul.mubr.bf16.vlgmr.msra.gmra.mxu1 %v1156_v38  ;;  %1276 = vmatpush3.bf16.msra.mxu0 %v1434_v42  ;;  %v1226_v38 = vld [vmem:[%s258_s25] ss:$0 sm:$0xff] }
  0x65   : > { %1298 = vmatpush3.bf16.msra.mxu1 %v1435_v43  ;;  %1277 = vmatprep.subr.bf16.mxu0 %v1436_v44 }
  0x66   : > { %1299 = vmatprep.subr.bf16.mxu1 %v1437_v45  ;;  %943 = vmatprep.mubr.bf16.mxu0 %v1159_v11 }
  0x67   : > { %984 = vmatprep.mubr.bf16.mxu1 %v1161_v15 }
  0x68   : > { %1278 = vmatpush3.bf16.msra.mxu0 %v1438_v46 }
  0x69   : > { %1300 = vmatpush3.bf16.msra.mxu1 %v1439_v47  ;;  %1279 = vmatprep.subr.bf16.mxu0 %v1440_v48 }
  0x6a   : > { %1301 = vmatprep.subr.bf16.mxu1 %v1441_v49 }
  0x6c   : > { %1280 = vmatpush3.bf16.msra.mxu0 %v1442_v50 }
  0x6d   : > { %1302 = vmatpush3.bf16.msra.mxu1 %v1443_v51  ;;  %1281 = vmatprep.subr.bf16.mxu0 %v1444_v52 }
  0x6e   : > { %1303 = vmatprep.subr.bf16.mxu1 %v1445_v53 }
  0x70   : > { %1282 = vmatpush3.bf16.msra.mxu0 %v1446_v54 }
  0x71   : > { %1304 = vmatpush3.bf16.msra.mxu1 %v1447_v55  ;;  %1283 = vmatprep.subr.bf16.mxu0 %v1448_v56 }
  0x72   : > { %1305 = vmatprep.subr.bf16.mxu1 %v1449_v57 }
  0x74   : > { %1284 = vmatpush3.bf16.msra.mxu0 %v1450_v58 }
  0x75   : > { %1306 = vmatpush3.bf16.msra.mxu1 %v1451_v59  ;;  %1285 = vmatprep.subr.bf16.mxu0 %v1452_v60 }
  0x76   : > { %1307 = vmatprep.subr.bf16.mxu1 %v1453_v61 }
  0x78   : > { %1286 = vmatpush3.bf16.msra.mxu0 %v1454_v62 }
  0x79   : > { %1308 = vmatpush3.bf16.msra.mxu1 %v1455_v63  ;;  %1287 = vmatprep.subr.bf16.mxu0 %v1456_v0 }
  0x7a   : > { %1309 = vmatprep.subr.bf16.mxu1 %v1457_v1 }
  0x7c   : > { %1288 = vmatpush3.bf16.msra.mxu0 %v1458_v2 }
  0x7d   : > { %1310 = vmatpush3.bf16.msra.mxu1 %v1459_v3  ;;  %1289 = vmatprep.subr.bf16.mxu0 %v1460_v4 }
  0x7e   : > { %1311 = vmatprep.subr.bf16.mxu1 %v1461_v5 }
  0x80   : > { %1290 = vmatpush3.bf16.msra.mxu0 %v1462_v6 }
  0x81   : > { %1312 = vmatpush3.bf16.msra.mxu1 %v1463_v7 }
  0x83   : > { %944 = vmatmul.mubr.bf16.vlgmr.msra.gmra.mxu0 %v1158_v10 }
  0x84   : > { %985 = vmatmul.mubr.bf16.vlgmr.msra.gmra.mxu1 %v1160_v14 }
 0x123   : > { %v1247_v16 = vpop.f32.mrf.mxu0 }
 0x124   : > { %v1269_v17 = vpop.f32.mrf.mxu1 }
 0x125   : > { %v1248_v18 = vpop.f32.mrf.mxu0 }
 0x126   : > { %v1270_v19 = vpop.f32.mrf.mxu1  ;;  %v1249_v23 = vadd.f32 %v1248_v18, %v1247_v16 }
 0x127   : > { %v1250_v20 = vpop.f32.mrf.mxu0  ;;  %v1271_v24 = vadd.f32 %v1270_v19, %v1269_v17 }
 0x128   : > { %v1272_v21 = vpop.f32.mrf.mxu1 }
 0x129   : > { %v1251_v22 = vpop.f32.mrf.mxu0  ;;  %v905_v29 = vadd.f32 %v1271_v24, %v1249_v23 }
 0x12a   : > { %v1273_v25 = vpop.f32.mrf.mxu1  ;;  %v1252_v30 = vadd.f32 %v1251_v22, %v1250_v20 }
 0x12b   : > { %v1274_v31 = vadd.f32 %v1273_v25, %v1272_v21 }
 0x12d   : > { %v908_v40 = vadd.f32 %v1274_v31, %v1252_v30 }
 0x143   : > { %v1291_v26 = vpop.f32.mrf.mxu0 }
 0x144   : > { %v1313_v27 = vpop.f32.mrf.mxu1 }
 0x145   : > { %v1292_v28 = vpop.f32.mrf.mxu0 }
 0x146   : > { %v1293_v32 = vadd.f32 %v1292_v28, %v1291_v26  ;;  %v1314_v33 = vpop.f32.mrf.mxu1 }
 0x147   : > { %v1294_v34 = vpop.f32.mrf.mxu0  ;;  %v1315_v36 = vadd.f32 %v1314_v33, %v1313_v27 }
 0x148   : > { %v946_v35 = vadd.f32 %v1293_v32, %v905_v29  ;;  %v1316_v37 = vpop.f32.mrf.mxu1 }
 0x149   : > { %v1295_v39 = vpop.f32.mrf.mxu0 }
 0x14a   : > { %v987_v41 = vadd.f32 %v1315_v36, %v946_v35  ;;  %v1296_v42 = vadd.f32 %v1295_v39, %v1294_v34  ;;  %v1317_v43 = vpop.f32.mrf.mxu1 }
 0x14b   : > { %v1318_v46 = vadd.f32 %v1317_v43, %v1316_v37 }
 0x14c   : > { %v1009_v44 = vadd.f32 %v1226_v38, %v987_v41  ;;  %v949_v45 = vadd.f32 %v1296_v42, %v908_v40 }
 0x14e   : > { %1011 = vst [vmem:[%s252_s4] sm:$0xff] %v1009_v44  ;;  %v990_v47 = vadd.f32 %v1318_v46, %v949_v45 }
 0x150   : > { %v1010_v48 = vadd.f32 %v1226_v38, %v990_v47 }
 0x152   : > { %1012 = vst [vmem:[%s252_s4 + $0x8] sm:$0xff] %v1010_v48 }
 0x153   : > { %1531 = shalt.err (!%p1528_p1)
}
 0x154   : > { %s1532_s19 = scalar_lea.hbm %s1834_s7, 256  ;;  %s1536_s17 = scalar_lea.hbm %s1885_s3, 512 }
 0x155   : > { %p1533_p5 = scmp.ne.s32.totalorder %s1834_s7, %s1532_s19  ;;  %p1537_p11 = scmp.lt.s32.totalorder %s1834_s7, %s1885_s3 }
 0x156   : > { %p1538_p2 = scmp.lt.s32.totalorder %s1536_s17, %s1532_s19 }
 0x157   : > { %p1534_p7 = pnand %p1533_p5, %p1902_p13 }
 0x158   : > { %p1539_p3 = por %p1538_p2, %p1537_p11 }
 0x159   : > { %p1535_p9 = pneg %p1534_p7 }
 0x15b   : > { %p1540_p12 = pnand %p1539_p3, %p1535_p9 }
 0x15d   : > { %1543 = shalt.err (!%p1540_p12)
}
 0x15e   : > { %s1612_s25 = smov 128   ;;  %s1613_s29 = smov 256  }
 0x15f   : > { %s1614_s4 = smov 8  }
 0x160   : > { %1325 = dma.vmem_to_hbm [thread:$0]  (%p1902_p13), %s1829_s28, 256, %s1834_s7, %s1014_s8, %s1612_s25, %s1613_s29, %s1614_s4  }
 0x161 PF: > { %s1903_s27 = sld [smem:[#allocation13_spill]]  ;;  %s1044_s6 = sand.u32 1, %s1582_s12  }
 0x162   : > { %s1904_s5 = sld [smem:[#allocation12_spill]]  ;;  %s1045_s11 = scalar_lea.sflag [#allocation5], %s1044_s6 }
 0x167   : > { %p1905_p4 = scmp.ne.s32.totalorder %s1903_s27, 0 }
 0x168   : > { %p1906_p6 = scmp.ge.s32.totalorder %s1904_s5, 2 }
 0x16a   : > { %p1336_p8 = pnand %p1906_p6, %p1905_p4 }
 0x16c   : > { %p1337_p10 = pneg %p1336_p8 }
 0x16e   : > { %1577 = dma.done.wait (%p1337_p10), %s1045_s11, 256  }
 0x16f   : > { %1579 = vsyncadd (%p1337_p10), %s1045_s11, 4294967040  ;;  %s20_s17 = sadd.s32 1, %s1904_s5   ;;  %s1907_s12 = smov %s1586_s13 }
 0x170   : > { %p17_p0 = scmp.ge.s32.totalorder %s20_s17, 4   ;;  %s1908_s13 = smov %s1590_s14 }
 0x171   : > { %s1909_s14 = smov %s1735_s24  ;;  %s1910_s15 = smov %s1598_s16 }
 0x172   : > { %s1911_s16 = smov %s1913_s30  ;;  %19 = sbr.rel (!%p17_p0) target bundleno = 7 (0x7), region = 94 }
 0x177   :  { %1050 = vsyncpa [#allocation4], 1 }
 0x178   :  { %1052 = vsyncpa [#allocation4 + $0x1], 1 }
 0x179   :  { %1053 = vsyncpa [#allocation7], 1 }
 0x17a   :  { %1055 = vsyncpa [#allocation7 + $0x1], 1 }
 0x17b   :  { %1056 = vsyncpa [#allocation5], 1 }
 0x17c   :  { %1058 = vsyncpa [#allocation5 + $0x1], 1 }

</bundles_post_ra>
